<compile_context>
chip_gen: v5e
topology: v5e:2x2
jax: 0.10.0
libtpu: 0.0.40
codegen_flags: <defaults>
</compile_context>

<pallas_src>
import jax
import jax.numpy as jnp
from jax.experimental import pallas as pl
from jax.experimental.pallas import tpu as pltpu


def _ffn_kernel(x_ref, w13_ref, w2_ref, o_ref, acc_ref):
    """One (row-tile, hidden-tile) step of the fused SwiGLU FFN."""
    h_idx = pl.program_id(1)

    @pl.when(h_idx == 0)
    def _():
        acc_ref[...] = jnp.zeros_like(acc_ref)

    th = w2_ref.shape[0]
    x = x_ref[...]                                                      # (tm, dim)
    # Fused gate projection: one LHS stream through the MXU for both w1 and w3
    # (w13 tile layout = [w1_tile | w3_tile], width 2*th).
    h13 = jnp.dot(x, w13_ref[...], preferred_element_type=jnp.float32)  # (tm, 2*th)
    h1 = h13[:, :th]
    h3 = h13[:, th:]
    h = (h1 * jax.nn.sigmoid(h1)) * h3                                  # SiLU gate (f32)
    acc_ref[...] += jnp.dot(h.astype(w2_ref.dtype), w2_ref[...],
                            preferred_element_type=jnp.float32)         # (tm, dim)

    @pl.when(h_idx == pl.num_programs(1) - 1)
    def _():
        o_ref[...] = acc_ref[...].astype(o_ref.dtype)


def _round_up(x, n):
    return -(-x // n) * n


def _select_th(hidden):
    """Largest 128-multiple divisor of hidden, capped at 512."""
    for cand in (512, 384, 256, 128):
        if hidden % cand == 0:
            return cand
    return hidden  # tiny hidden: single full block


def _vmem_capacity_bytes():
    try:
        return int(pltpu.get_tpu_info().vmem_capacity_bytes)
    except Exception:  # pragma: no cover - conservative fallback (v7x-sized)
        return 64 << 20


def _select_tm_and_vmem(m, dim, hidden, th, itemsize):
    """Pick the row tile and an explicit VMEM cap from the chip's capacity."""
    vmem_cap = _vmem_capacity_bytes()
    budget = (vmem_cap * 3) // 4

    def footprint(tm):
        io_elems = (tm * dim) + (dim * 2 * th) + (th * dim) + (tm * dim)
        # default double-buffered I/O blocks + resident f32 accumulator
        return 2 * io_elems * itemsize + tm * dim * 4

    tm = 128
    for cand in (1024, 512, 256, 128):
        if footprint(cand) <= budget:
            tm = cand
            break
    if m <= tm:
        if m > 256:
            # >=2 row tiles so the "parallel" axis can shard across 2 TCs (v7x).
            tm = max(128, _round_up(_round_up(m, 2) // 2, 8))
        else:
            tm = m  # block equals full array dim -> legal for tiny decode shapes
    vmem_limit = min(vmem_cap, footprint(tm) + (16 << 20))
    return tm, vmem_limit


def fuse_gate_weights(w1, w3, th):
    """Tile-interleave w1/w3 so fused block j = [w1[:, j*th:(j+1)*th] | w3[...]]."""
    dim, hidden = w1.shape
    assert hidden % th == 0
    nh = hidden // th
    w1t = w1.reshape(dim, nh, th)
    w3t = w3.reshape(dim, nh, th)
    return jnp.concatenate([w1t, w3t], axis=-1).reshape(dim, nh * 2 * th)


def feed_forward(x, w1, w2, w3, *, w13=None, tm=None, th=None,
                 vmem_limit_bytes=None):
    """Computes (silu(x @ w1) * (x @ w3)) @ w2 with a fused Pallas kernel.

    Weight layout (in_features, out_features):
      w1: (dim, hidden), w3: (dim, hidden), w2: (hidden, dim)
    Optionally pass a pre-fused `w13` (see fuse_gate_weights) to avoid the
    per-call concatenation.
    """
    orig_shape = x.shape
    dim = orig_shape[-1]
    hidden = w2.shape[0]
    assert w2.shape == (hidden, dim)

    x2d = x.reshape(-1, dim)
    m = x2d.shape[0]
    itemsize = max(jnp.dtype(x.dtype).itemsize, jnp.dtype(w2.dtype).itemsize)

    if th is None:
        th = _select_th(hidden)
    assert hidden % th == 0, "hidden_dim must be divisible by the hidden tile"

    auto_tm, auto_vmem = _select_tm_and_vmem(m, dim, hidden, th, itemsize)
    tm = auto_tm if tm is None else tm
    vmem_limit_bytes = auto_vmem if vmem_limit_bytes is None else vmem_limit_bytes

    if w13 is None:
        assert w1.shape == (dim, hidden) and w3.shape == (dim, hidden)
        w13 = fuse_gate_weights(w1, w3, th)

    # Partial trailing row tile is masked by Pallas (no jnp.pad copy of x).
    grid = (pl.cdiv(m, tm), hidden // th)

    wbytes = jnp.dtype(w13.dtype).itemsize
    cost = pl.CostEstimate(
        flops=6 * m * dim * hidden,
        transcendentals=m * hidden,
        bytes_accessed=3 * dim * hidden * wbytes * grid[0]
        + 2 * m * dim * jnp.dtype(x.dtype).itemsize,
    )

    out = pl.pallas_call(
        _ffn_kernel,
        out_shape=jax.ShapeDtypeStruct((m, dim), x.dtype),
        grid_spec=pltpu.PrefetchScalarGridSpec(
            num_scalar_prefetch=0,
            grid=grid,
            in_specs=[
                pl.BlockSpec((tm, dim), lambda i, j: (i, 0)),        # x rows
                pl.BlockSpec((dim, 2 * th), lambda i, j: (0, j)),    # [w1|w3] tile
                pl.BlockSpec((th, dim), lambda i, j: (j, 0)),        # w2 tile
            ],
            out_specs=pl.BlockSpec((tm, dim), lambda i, j: (i, 0)),
            scratch_shapes=[pltpu.VMEM((tm, dim), jnp.float32)],
        ),
        compiler_params=pltpu.CompilerParams(
            dimension_semantics=("parallel", "arbitrary"),
            vmem_limit_bytes=int(vmem_limit_bytes)),
        cost_estimate=cost,
    )(x2d, w13, w2)

    return out.reshape(orig_shape)


class FeedForwardJax:
    """Mirrors the PyTorch FeedForward module (bias-free SwiGLU FFN)."""

    def __init__(self, dim, hidden_dim, multiple_of, ffn_dim_multiplier, key,
                 dtype=jnp.bfloat16):
        hidden_dim = int(2 * hidden_dim // 3)
        if ffn_dim_multiplier is not None:
            hidden_dim = int(ffn_dim_multiplier * hidden_dim)
        hidden_dim = multiple_of * ((hidden_dim + multiple_of - 1) // multiple_of)
        self.dim = dim
        self.hidden_dim = hidden_dim
        self.dtype = dtype

        k1, k2, k3 = jax.random.split(key, 3)
        # (in_features, out_features) layout; bf16 storage halves weight HBM
        # traffic and runs the MXU at full bf16 rate.
        self.w1 = (jax.random.normal(k1, (dim, hidden_dim), jnp.float32)
                   / jnp.sqrt(dim)).astype(dtype)
        self.w3 = (jax.random.normal(k3, (dim, hidden_dim), jnp.float32)
                   / jnp.sqrt(dim)).astype(dtype)
        self.w2 = (jax.random.normal(k2, (hidden_dim, dim), jnp.float32)
                   / jnp.sqrt(hidden_dim)).astype(dtype)

        # Pre-fuse the gate weights once so every forward streams x through the
        # MXU a single time for both projections.
        self.th = _select_th(hidden_dim)
        self.w13 = fuse_gate_weights(self.w1, self.w3, self.th)

    def forward(self, x):
        return feed_forward(x, self.w1, self.w2, self.w3,
                            w13=self.w13, th=self.th)

    __call__ = forward


if __name__ == "__main__":
    # Small deterministic example: dim=128, hidden_dim arg=512 -> SwiGLU hidden
    # = multiple_of * ceil((2*512//3)/128) = 384; batch=2, seq=8.
    dim, hidden_dim_arg, multiple_of = 128, 512, 128
    batch, seq = 2, 8
    dtype = jnp.bfloat16

    key = jax.random.PRNGKey(0)
    wkey, xkey = jax.random.split(key)

    ffn = FeedForwardJax(dim, hidden_dim_arg, multiple_of, None, wkey, dtype)
    x = jax.random.normal(xkey, (batch, seq, dim), jnp.float32).astype(dtype)

    out = ffn(x)
    jax.block_until_ready(out)

    # Pure-JAX f32 reference of the SwiGLU forward on the bf16-quantized params.
    xf = x.astype(jnp.float32)
    w1f = ffn.w1.astype(jnp.float32)
    w2f = ffn.w2.astype(jnp.float32)
    w3f = ffn.w3.astype(jnp.float32)
    ref = (jax.nn.silu(xf @ w1f) * (xf @ w3f)) @ w2f

    assert out.shape == (batch, seq, dim)
    err = float(jnp.max(jnp.abs(out.astype(jnp.float32) - ref)))
    assert err < 5e-2, err  # bf16-appropriate tolerance

    print("KERNEL_OK")
</pallas_src>

<mosaic_0001>
module attributes {stable_mosaic.version = 11 : i64} {
  func.func @_ffn_kernel(%arg0: i32, %arg1: i32, %arg2: memref<16x128xbf16, #tpu.memory_space<vmem>>, %arg3: memref<128x768xbf16, #tpu.memory_space<vmem>>, %arg4: memref<384x128xbf16, #tpu.memory_space<vmem>>, %arg5: memref<16x128xbf16, #tpu.memory_space<vmem>>, %arg6: memref<16x128xf32, #tpu.memory_space<vmem>>) attributes {dimension_semantics = [#tpu.dimension_semantics<parallel>, #tpu.dimension_semantics<arbitrary>], iteration_bounds = array<i64: 1, 1>, scalar_prefetch = 0 : i64, scratch_operands = 1 : i64, tpu.core_type = #tpu.core_type<tc>, window_params = [{transform_indices = @transform_0, window_bounds = array<i64: 16, 128>}, {transform_indices = @transform_1, window_bounds = array<i64: 128, 768>}, {transform_indices = @transform_2, window_bounds = array<i64: 384, 128>}, {transform_indices = @transform_3, window_bounds = array<i64: 16, 128>}]} {
    %c0_i32 = arith.constant 0 : i32
    %0 = arith.cmpi eq, %arg1, %c0_i32 : i32
    %1 = arith.extui %0 : i1 to i32
    %c0_i32_0 = arith.constant 0 : i32
    %2 = arith.cmpi ne, %1, %c0_i32_0 : i32
    scf.if %2 {
      %cst_14 = arith.constant 0.000000e+00 : f32
      %24 = vector.broadcast %cst_14 : f32 to vector<16x128xf32>
      %c0_15 = arith.constant 0 : index
      %c0_16 = arith.constant 0 : index
      %25 = vector.load %arg6[%c0_15, %c0_16] : memref<16x128xf32, #tpu.memory_space<vmem>>, vector<16x128xf32>
      tpu.vector_store %arg6[%c0_15, %c0_16], %24 {strides = array<i32>} : memref<16x128xf32, #tpu.memory_space<vmem>>, vector<16x128xf32>,
    } else {
    }
    %c0 = arith.constant 0 : index
    %c0_1 = arith.constant 0 : index
    %3 = vector.load %arg2[%c0, %c0_1] : memref<16x128xbf16, #tpu.memory_space<vmem>>, vector<16x128xbf16>
    %c0_2 = arith.constant 0 : index
    %c0_3 = arith.constant 0 : index
    %4 = vector.load %arg3[%c0_2, %c0_3] : memref<128x768xbf16, #tpu.memory_space<vmem>>, vector<128x768xbf16>
    %cst = arith.constant dense<0.000000e+00> : vector<16x768xf32>
    %5 = tpu.matmul %3, %4, %cst {dimension_numbers = #tpu.dot_dimension_numbers<[1], [0], [0], [1], [0, 0, 1, 1], [], []>} : vector<16x128xbf16>, vector<128x768xbf16>, vector<16x768xf32> -> vector<16x768xf32>
    %6 = vector.extract_strided_slice %5 {offsets = [0, 0], sizes = [16, 384], strides = [1, 1]} : vector<16x768xf32> to vector<16x384xf32>
    %7 = vector.extract_strided_slice %5 {offsets = [0, 384], sizes = [16, 384], strides = [1, 1]} : vector<16x768xf32> to vector<16x384xf32>
    %8 = arith.negf %6 : vector<16x384xf32>
    %9 = math.exp %8 : vector<16x384xf32>
    %cst_4 = arith.constant 1.000000e+00 : f32
    %10 = vector.broadcast %cst_4 : f32 to vector<16x384xf32>
    %11 = arith.addf %10, %9 : vector<16x384xf32>
    %12 = arith.divf %10, %11 : vector<16x384xf32>
    %13 = arith.mulf %6, %12 : vector<16x384xf32>
    %14 = arith.mulf %13, %7 : vector<16x384xf32>
    %c0_5 = arith.constant 0 : index
    %c0_6 = arith.constant 0 : index
    %15 = vector.load %arg6[%c0_5, %c0_6] : memref<16x128xf32, #tpu.memory_space<vmem>>, vector<16x128xf32>
    %16 = arith.truncf %14 : vector<16x384xf32> to vector<16x384xbf16>
    %c0_7 = arith.constant 0 : index
    %c0_8 = arith.constant 0 : index
    %17 = vector.load %arg4[%c0_7, %c0_8] : memref<384x128xbf16, #tpu.memory_space<vmem>>, vector<384x128xbf16>
    %cst_9 = arith.constant dense<0.000000e+00> : vector<16x128xf32>
    %18 = tpu.matmul %16, %17, %cst_9 {dimension_numbers = #tpu.dot_dimension_numbers<[1], [0], [0], [1], [0, 0, 1, 1], [], []>} : vector<16x384xbf16>, vector<384x128xbf16>, vector<16x128xf32> -> vector<16x128xf32>
    %19 = arith.addf %15, %18 : vector<16x128xf32>
    %c0_10 = arith.constant 0 : index
    %c0_11 = arith.constant 0 : index
    %20 = vector.load %arg6[%c0_10, %c0_11] : memref<16x128xf32, #tpu.memory_space<vmem>>, vector<16x128xf32>
    tpu.vector_store %arg6[%c0_10, %c0_11], %19 {strides = array<i32>} : memref<16x128xf32, #tpu.memory_space<vmem>>, vector<16x128xf32>,
    %c0_i32_12 = arith.constant 0 : i32
    %21 = arith.cmpi eq, %arg1, %c0_i32_12 : i32
    %22 = arith.extui %21 : i1 to i32
    %c0_i32_13 = arith.constant 0 : i32
    %23 = arith.cmpi ne, %22, %c0_i32_13 : i32
    scf.if %23 {
      %c0_14 = arith.constant 0 : index
      %c0_15 = arith.constant 0 : index
      %24 = vector.load %arg6[%c0_14, %c0_15] : memref<16x128xf32, #tpu.memory_space<vmem>>, vector<16x128xf32>
      %25 = arith.truncf %24 : vector<16x128xf32> to vector<16x128xbf16>
      %c0_16 = arith.constant 0 : index
      %c0_17 = arith.constant 0 : index
      %26 = vector.load %arg5[%c0_16, %c0_17] : memref<16x128xbf16, #tpu.memory_space<vmem>>, vector<16x128xbf16>
      tpu.vector_store %arg5[%c0_16, %c0_17], %25 {strides = array<i32>} : memref<16x128xbf16, #tpu.memory_space<vmem>>, vector<16x128xbf16>,
    } else {
    }
    return
  }
  func.func @transform_0(%arg0: i32, %arg1: i32) -> (i32, i32) {
    %c0_i32 = arith.constant 0 : i32
    %c0_i32_0 = arith.constant 0 : i32
    return %arg0, %c0_i32 : i32, i32
  }
  func.func @transform_1(%arg0: i32, %arg1: i32) -> (i32, i32) {
    %c0_i32 = arith.constant 0 : i32
    %c0_i32_0 = arith.constant 0 : i32
    return %c0_i32, %arg1 : i32, i32
  }
  func.func @transform_2(%arg0: i32, %arg1: i32) -> (i32, i32) {
    %c0_i32 = arith.constant 0 : i32
    %c0_i32_0 = arith.constant 0 : i32
    return %arg1, %c0_i32 : i32, i32
  }
  func.func @transform_3(%arg0: i32, %arg1: i32) -> (i32, i32) {
    %c0_i32 = arith.constant 0 : i32
    %c0_i32_0 = arith.constant 0 : i32
    return %arg0, %c0_i32 : i32, i32
  }
}

</mosaic_0001>

<bundles_post_ra>
// kernel: tpu_custom_call.1
= control target key start
LH: loop header
LB: loop body
LE: loop exit
PB: predicated region body
PF: predicated region fallthrough
CT: control target
= control target key end

     0   :  { %8 = vsyncpa [#allocation4], 0  ;;  %s1532_s0 = inlined_call_operand.hbm [shape: bf16[16,128], index: 0, kind: input, shape index: {}]   ;;  %s1533_s1 = inlined_call_operand.hbm [shape: bf16[128,768], index: 1, kind: input, shape index: {}]   ;;  %s1534_s2 = inlined_call_operand.hbm [shape: bf16[384,128], index: 2, kind: input, shape index: {}]   ;;  %s1535_s3 = inlined_call_operand.hbm [shape: bf16[16,128], index: 3, kind: output, shape index: {}]  }
   0x1   :  { %9 = vsyncpa [#allocation7], 0  ;;  %s28_s14 = sshll.u32 %s1533_s1, 4  ;;  %s29_s14 = int_to_ptr.hbm [resolvable:$true] %s28_s14 }
   0x2   :  { %10 = vsyncpa [#allocation5], 0  ;;  %s1356_s15 = smov [#allocation6]   ;;  %s15_s19 = sshll.u32 %s1532_s0, 4  ;;  %s16_s19 = int_to_ptr.hbm [resolvable:$true] %s15_s19 }
   0x3   :  { %s30_s16 = sshll.u32 %s1356_s15, 4  ;;  %s1357_s20 = smov 384   ;;  %s31_s16 = int_to_ptr.vmem [resolvable:$true] %s30_s16 }
   0x4   :  { %s1358_s21 = smov 24   ;;  %s1359_s22 = smov [#allocation3]  }
   0x5   :  { %36 = dma.hbm_to_vmem [thread:$0]  %s29_s14, 6144, %s31_s16, [#allocation7], %s1357_s20, %s1357_s20, %s1358_s21  }
   0x6   :  { %s17_s23 = sshll.u32 %s1359_s22, 4  ;;  %s1360_s24 = smov 64   ;;  %s18_s23 = int_to_ptr.vmem [resolvable:$true] %s17_s23 }
   0x7   :  { %s1361_s25 = smov 4   ;;  %s41_s27 = sshll.u32 %s1534_s2, 4  ;;  %s42_s27 = int_to_ptr.hbm [resolvable:$true] %s41_s27 }
   0x8   :  { %23 = dma.hbm_to_vmem [thread:$0]  %s16_s19, 128, %s18_s23, [#allocation4], %s1360_s24, %s1360_s24, %s1361_s25  }
   0x9   :  { %s1362_s28 = smov [#allocation8]  }
   0xa   :  { %s43_s0 = sshll.u32 %s1362_s28, 4  ;;  %s44_s0 = int_to_ptr.vmem [resolvable:$true] %s43_s0 }
   0xb   :  { %49 = dma.hbm_to_vmem [thread:$0]  %s42_s27, 3072, %s44_s0, [#allocation7], %s1360_s24, %s1360_s24, %s1361_s25  }
   0xc   :  { %1350 = dma.done.wait [#allocation4], 128  }
   0xd   :  { %1351 = vsyncadd [#allocation4], 4294967168 }
   0xe   :  { %1352 = dma.done.wait [#allocation7], 9216  }
   0xf   :  { %1353 = vsyncadd [#allocation7], 4294958080  ;;  %v1020_v0 = vld [vmem:[#allocation6 + $0x150] sm:$0xf]  ;;  %v1190_v1 = vld [vmem:[#allocation6 + $0x164] sm:$0xf0] }
  0x10   :  { %v1187_v2 = vld [vmem:[#allocation6 + $0x154] sm:$0xf]  ;;  %v1021_v3 = vor.u32 %v1190_v1, %v1020_v0  ;;  %v1022_v4 = vld [vmem:[#allocation6 + $0x168] sm:$0xf0]  ;;  %v1028_v5 = vld [vmem:[#allocation6 + $0x158] sm:$0xf] }
  0x11   :  { %v1191_v6 = vld [vmem:[#allocation6 + $0x16c] sm:$0xf0]  ;;  %v1025_v7 = vor.u32 %v1187_v2, %v1022_v4  ;;  %v996_v9 = vld [vmem:[#allocation6 + $0x120] sm:$0xf]  ;;  %v1184_v10 = vld [vmem:[#allocation6 + $0x134] sm:$0xf0] }
  0x12   :  { %v1029_v8 = vor.u32 %v1191_v6, %v1028_v5  ;;  %v1181_v11 = vld [vmem:[#allocation6 + $0x124] sm:$0xf]  ;;  %364 = vmatpush.bf16.msra.mxu0 %v1021_v3  ;;  %v997_v12 = vor.u32 %v1184_v10, %v996_v9  ;;  %v998_v13 = vld [vmem:[#allocation6 + $0x138] sm:$0xf0]  ;;  %v1004_v14 = vld [vmem:[#allocation6 + $0x128] sm:$0xf] }
  0x13   :  { %v1185_v15 = vld [vmem:[#allocation6 + $0x13c] sm:$0xf0]  ;;  %378 = vmatpush.bf16.msra.mxu1 %v1025_v7  ;;  %v1001_v16 = vor.u32 %v1181_v11, %v998_v13  ;;  %v972_v18 = vld [vmem:[#allocation6 + $0xf0] sm:$0xf]  ;;  %v1178_v19 = vld [vmem:[#allocation6 + $0x104] sm:$0xf0] }
  0x14   :  { %392 = vmatpush.bf16.msra.mxu2 %v1029_v8  ;;  %v1005_v17 = vor.u32 %v1185_v15, %v1004_v14  ;;  %v1175_v20 = vld [vmem:[#allocation6 + $0xf4] sm:$0xf]  ;;  %v974_v21 = vld [vmem:[#allocation6 + $0x108] sm:$0xf0]  ;;  %v980_v22 = vld [vmem:[#allocation6 + $0xf8] sm:$0xf]  ;;  %v973_v24 = vor.u32 %v1178_v19, %v972_v18 }
  0x15   :  { %v1179_v23 = vld [vmem:[#allocation6 + $0x10c] sm:$0xf0]  ;;  %v977_v25 = vor.u32 %v1175_v20, %v974_v21  ;;  %v948_v27 = vld [vmem:[#allocation6 + $0xc0] sm:$0xf]  ;;  %v1172_v28 = vld [vmem:[#allocation6 + $0xd4] sm:$0xf0] }
  0x16   :  { %365 = vmatpush.bf16.msra.mxu0 %v997_v12  ;;  %v981_v26 = vor.u32 %v1179_v23, %v980_v22  ;;  %v1169_v29 = vld [vmem:[#allocation6 + $0xc4] sm:$0xf]  ;;  %v950_v30 = vld [vmem:[#allocation6 + $0xd8] sm:$0xf0]  ;;  %v956_v31 = vld [vmem:[#allocation6 + $0xc8] sm:$0xf]  ;;  %v949_v35 = vor.u32 %v1172_v28, %v948_v27 }
  0x17   :  { %379 = vmatpush.bf16.msra.mxu1 %v1001_v16  ;;  %v1173_v32 = vld [vmem:[#allocation6 + $0xdc] sm:$0xf0]  ;;  %v1188_v33 = vld [vmem:[#allocation6 + $0x15c] sm:$0xf]  ;;  %v1030_v34 = vld [vmem:[#allocation6 + $0x170] sm:$0xf0]  ;;  %v953_v39 = vor.u32 %v1169_v29, %v950_v30 }
  0x18   :  { %393 = vmatpush.bf16.msra.mxu2 %v1005_v17  ;;  %v924_v36 = vld [vmem:[#allocation6 + $0x90] sm:$0xf]  ;;  %v1166_v37 = vld [vmem:[#allocation6 + $0xa4] sm:$0xf0]  ;;  %v1033_v38 = vor.u32 %v1188_v33, %v1030_v34  ;;  %v957_v40 = vor.u32 %v1173_v32, %v956_v31  ;;  %v1163_v41 = vld [vmem:[#allocation6 + $0x94] sm:$0xf] }
  0x19   :  { %v926_v42 = vld [vmem:[#allocation6 + $0xa8] sm:$0xf0]  ;;  %v932_v44 = vld [vmem:[#allocation6 + $0x98] sm:$0xf]  ;;  %v1167_v45 = vld [vmem:[#allocation6 + $0xac] sm:$0xf0]  ;;  %v925_v48 = vor.u32 %v1166_v37, %v924_v36 }
  0x1a   :  { %366 = vmatpush.bf16.msra.mxu0 %v973_v24  ;;  %v1182_v43 = vld [vmem:[#allocation6 + $0x12c] sm:$0xf]  ;;  %406 = vmatpush.bf16.msra.mxu3 %v1033_v38  ;;  %v1006_v46 = vld [vmem:[#allocation6 + $0x140] sm:$0xf0]  ;;  %v1176_v49 = vld [vmem:[#allocation6 + $0xfc] sm:$0xf]  ;;  %v929_v51 = vor.u32 %v1163_v41, %v926_v42  ;;  %v933_v52 = vor.u32 %v1167_v45, %v932_v44 }
  0x1b   :  { %380 = vmatpush.bf16.msra.mxu1 %v977_v25  ;;  %v1009_v47 = vor.u32 %v1182_v43, %v1006_v46  ;;  %v982_v50 = vld [vmem:[#allocation6 + $0x110] sm:$0xf0]  ;;  %v900_v53 = vld [vmem:[#allocation6 + $0x60] sm:$0xf]  ;;  %v1160_v54 = vld [vmem:[#allocation6 + $0x74] sm:$0xf0] }
  0x1c   :  { %394 = vmatpush.bf16.msra.mxu2 %v981_v26  ;;  %v1157_v55 = vld [vmem:[#allocation6 + $0x64] sm:$0xf]  ;;  %v902_v56 = vld [vmem:[#allocation6 + $0x78] sm:$0xf0]  ;;  %v908_v57 = vld [vmem:[#allocation6 + $0x68] sm:$0xf]  ;;  %v985_v59 = vor.u32 %v1176_v49, %v982_v50  ;;  %v901_v62 = vor.u32 %v1160_v54, %v900_v53 }
  0x1d   :  { %v1161_v58 = vld [vmem:[#allocation6 + $0x7c] sm:$0xf0]  ;;  %v1170_v60 = vld [vmem:[#allocation6 + $0xcc] sm:$0xf]  ;;  %v958_v61 = vld [vmem:[#allocation6 + $0xe0] sm:$0xf0]  ;;  %v905_v63 = vor.u32 %v1157_v55, %v902_v56 }
  0x1e   :  { %367 = vmatpush.bf16.msra.mxu0 %v949_v35  ;;  %407 = vmatpush.bf16.msra.mxu3 %v1009_v47  ;;  %v909_v0 = vor.u32 %v1161_v58, %v908_v57  ;;  %v876_v1 = vld [vmem:[#allocation6 + $0x30] sm:$0xf]  ;;  %v1154_v2 = vld [vmem:[#allocation6 + $0x44] sm:$0xf0]  ;;  %v1151_v3 = vld [vmem:[#allocation6 + $0x34] sm:$0xf]  ;;  %v961_v7 = vor.u32 %v1170_v60, %v958_v61 }
  0x1f   :  { %381 = vmatpush.bf16.msra.mxu1 %v953_v39  ;;  %v878_v4 = vld [vmem:[#allocation6 + $0x48] sm:$0xf0]  ;;  %v884_v5 = vld [vmem:[#allocation6 + $0x38] sm:$0xf]  ;;  %v1155_v6 = vld [vmem:[#allocation6 + $0x4c] sm:$0xf0]  ;;  %v877_v10 = vor.u32 %v1154_v2, %v876_v1 }
  0x20   :  { %395 = vmatpush.bf16.msra.mxu2 %v957_v40  ;;  %v1164_v8 = vld [vmem:[#allocation6 + $0x9c] sm:$0xf]  ;;  %v934_v9 = vld [vmem:[#allocation6 + $0xb0] sm:$0xf0]  ;;  %v852_v11 = vld [vmem:[#allocation6] sm:$0xf]  ;;  %v881_v12 = vor.u32 %v1151_v3, %v878_v4  ;;  %v885_v13 = vor.u32 %v1155_v6, %v884_v5 }
  0x21   :  { %v1148_v14 = vld [vmem:[#allocation6 + $0x14] sm:$0xf0]  ;;  %v1145_v15 = vld [vmem:[#allocation6 + $0x4] sm:$0xf]  ;;  %v854_v16 = vld [vmem:[#allocation6 + $0x18] sm:$0xf0]  ;;  %v937_v20 = vor.u32 %v1164_v8, %v934_v9 }
  0x22   :  { %368 = vmatpush.bf16.msra.mxu0 %v925_v48  ;;  %408 = vmatpush.bf16.msra.mxu3 %v985_v59  ;;  %v860_v17 = vld [vmem:[#allocation6 + $0x8] sm:$0xf]  ;;  %v1149_v18 = vld [vmem:[#allocation6 + $0x1c] sm:$0xf0]  ;;  %v1192_v21 = vld [vmem:[#allocation6 + $0x174] sm:$0xf0]  ;;  %v853_v24 = vor.u32 %v1148_v14, %v852_v11  ;;  %v857_v27 = vor.u32 %v1145_v15, %v854_v16 }
  0x23   :  { %382 = vmatpush.bf16.msra.mxu1 %v929_v51  ;;  %v1036_v19 = vld [vmem:[#allocation6 + $0x160] sm:$0xf]  ;;  %v1189_v22 = vld [vmem:[#allocation6 + $0x164] sm:$0xf]  ;;  %v1038_v23 = vld [vmem:[#allocation6 + $0x178] sm:$0xf0]  ;;  %v861_v28 = vor.u32 %v1149_v18, %v860_v17 }
  0x24   :  { %396 = vmatpush.bf16.msra.mxu2 %v933_v52  ;;  %v1158_v25 = vld [vmem:[#allocation6 + $0x6c] sm:$0xf]  ;;  %v910_v26 = vld [vmem:[#allocation6 + $0x80] sm:$0xf0]  ;;  %v1037_v29 = vor.u32 %v1192_v21, %v1036_v19  ;;  %v1041_v30 = vor.u32 %v1189_v22, %v1038_v23  ;;  %v1399_v31 = vld [vmem:[#allocation3] sm:$0xff]  ;;  %s1363_s2 = smov [#allocation9]  }
  0x25   :  { %v1012_v32 = vld [vmem:[#allocation6 + $0x130] sm:$0xf]  ;;  %v1186_v33 = vld [vmem:[#allocation6 + $0x144] sm:$0xf0]  ;;  %v1183_v34 = vld [vmem:[#allocation6 + $0x134] sm:$0xf]  ;;  %v913_v36 = vor.u32 %v1158_v25, %v910_v26 }
  0x26   :  { %369 = vmatpush.bf16.msra.mxu0 %v901_v62  ;;  %409 = vmatpush.bf16.msra.mxu3 %v961_v7  ;;  %v1014_v35 = vld [vmem:[#allocation6 + $0x148] sm:$0xf0]  ;;  %v1152_v37 = vld [vmem:[#allocation6 + $0x3c] sm:$0xf]  ;;  %v886_v38 = vld [vmem:[#allocation6 + $0x50] sm:$0xf0]  ;;  %v1013_v39 = vor.u32 %v1186_v33, %v1012_v32 }
  0x27   :  { %383 = vmatpush.bf16.msra.mxu1 %v905_v63  ;;  %v1017_v40 = vor.u32 %v1183_v34, %v1014_v35  ;;  %v988_v41 = vld [vmem:[#allocation6 + $0x100] sm:$0xf]  ;;  %v1180_v42 = vld [vmem:[#allocation6 + $0x114] sm:$0xf0]  ;;  %v1177_v43 = vld [vmem:[#allocation6 + $0x104] sm:$0xf]  ;;  %v889_v45 = vor.u32 %v1152_v37, %v886_v38 }
  0x28   :  { %397 = vmatpush.bf16.msra.mxu2 %v909_v0  ;;  %v990_v44 = vld [vmem:[#allocation6 + $0x118] sm:$0xf0]  ;;  %v1146_v46 = vld [vmem:[#allocation6 + $0xc] sm:$0xf]  ;;  %v862_v47 = vld [vmem:[#allocation6 + $0x20] sm:$0xf0]  ;;  %v989_v48 = vor.u32 %v1180_v42, %v988_v41 }
  0x29   :  { %v993_v49 = vor.u32 %v1177_v43, %v990_v44  ;;  %v964_v50 = vld [vmem:[#allocation6 + $0xd0] sm:$0xf]  ;;  %v1174_v51 = vld [vmem:[#allocation6 + $0xe4] sm:$0xf0]  ;;  %v1171_v52 = vld [vmem:[#allocation6 + $0xd4] sm:$0xf]  ;;  %v865_v54 = vor.u32 %v1146_v46, %v862_v47 }
  0x2a   :  { %370 = vmatpush.bf16.msra.mxu0 %v877_v10  ;;  %410 = vmatpush.bf16.msra.mxu3 %v937_v20  ;;  %v966_v53 = vld [vmem:[#allocation6 + $0xe8] sm:$0xf0]  ;;  %v965_v55 = vor.u32 %v1174_v51, %v964_v50  ;;  %v940_v57 = vld [vmem:[#allocation6 + $0xa0] sm:$0xf]  ;;  %v1168_v58 = vld [vmem:[#allocation6 + $0xb4] sm:$0xf0] }
  0x2b   :  { %384 = vmatpush.bf16.msra.mxu1 %v881_v12  ;;  %v969_v56 = vor.u32 %v1171_v52, %v966_v53  ;;  %v1165_v59 = vld [vmem:[#allocation6 + $0xa4] sm:$0xf]  ;;  %v942_v60 = vld [vmem:[#allocation6 + $0xb8] sm:$0xf0]  ;;  %v941_v61 = vor.u32 %v1168_v58, %v940_v57  ;;  %v916_v63 = vld [vmem:[#allocation6 + $0x70] sm:$0xf] }
  0x2c   :  { %398 = vmatpush.bf16.msra.mxu2 %v885_v13  ;;  %v945_v62 = vor.u32 %v1165_v59, %v942_v60  ;;  %v1162_v0 = vld [vmem:[#allocation6 + $0x84] sm:$0xf0]  ;;  %v1159_v1 = vld [vmem:[#allocation6 + $0x74] sm:$0xf]  ;;  %v918_v2 = vld [vmem:[#allocation6 + $0x88] sm:$0xf0] }
  0x2d   :  { %v917_v3 = vor.u32 %v1162_v0, %v916_v63  ;;  %v921_v4 = vor.u32 %v1159_v1, %v918_v2  ;;  %v892_v5 = vld [vmem:[#allocation6 + $0x40] sm:$0xf]  ;;  %v1156_v6 = vld [vmem:[#allocation6 + $0x54] sm:$0xf0]  ;;  %v1153_v7 = vld [vmem:[#allocation6 + $0x44] sm:$0xf] }
  0x2e   :  { %371 = vmatpush.bf16.msra.mxu0 %v853_v24  ;;  %411 = vmatpush.bf16.msra.mxu3 %v913_v36  ;;  %v894_v8 = vld [vmem:[#allocation6 + $0x58] sm:$0xf0]  ;;  %v893_v9 = vor.u32 %v1156_v6, %v892_v5  ;;  %v868_v11 = vld [vmem:[#allocation6 + $0x10] sm:$0xf]  ;;  %v1150_v12 = vld [vmem:[#allocation6 + $0x24] sm:$0xf0] }
  0x2f   :  { %385 = vmatpush.bf16.msra.mxu1 %v857_v27  ;;  %v897_v10 = vor.u32 %v1153_v7, %v894_v8  ;;  %v1147_v13 = vld [vmem:[#allocation6 + $0x14] sm:$0xf]  ;;  %v870_v14 = vld [vmem:[#allocation6 + $0x28] sm:$0xf0]  ;;  %v869_v15 = vor.u32 %v1150_v12, %v868_v11  ;;  %v1200_v17 = vld [vmem:[#allocation8 + $0x38] sm:$0xff]  ;;  %s830_s29 = sshll.u32 %s1363_s2, 4  ;;  %s831_s29 = int_to_ptr.vmem [resolvable:$true] %s830_s29 }
  0x30   :  { %399 = vmatpush.bf16.msra.mxu2 %v861_v28  ;;  %v873_v16 = vor.u32 %v1147_v13, %v870_v14  ;;  %v1208_v18 = vld [vmem:[#allocation8 + $0x78] sm:$0xff]  ;;  %v1199_v19 = vld [vmem:[#allocation8 + $0x30] sm:$0xff]  ;;  %v1198_v22 = vld [vmem:[#allocation8 + $0x28] sm:$0xff]  ;;  %s832_s5 = sshll.u32 %s1535_s3, 4  ;;  %s833_s5 = int_to_ptr.hbm [resolvable:$true] %s832_s5 }
  0x31   :  { %372 = vmatmul.bf16.vlgmr.msra.gmra.mxu0 %v1399_v31  ;;  %v1207_v20 = vld [vmem:[#allocation8 + $0x70] sm:$0xff]  ;;  %v1216_v21 = vld [vmem:[#allocation8 + $0xb8] sm:$0xff]  ;;  %v1206_v23 = vld [vmem:[#allocation8 + $0x68] sm:$0xff] }
  0x32   :  { %420 = vmatpush.bf16.msrb.mxu0 %v1037_v29  ;;  %386 = vmatmul.bf16.vlgmr.msra.gmra.mxu1 %v1399_v31  ;;  %v1215_v24 = vld [vmem:[#allocation8 + $0xb0] sm:$0xff]  ;;  %v1197_v25 = vld [vmem:[#allocation8 + $0x20] sm:$0xff]  ;;  %v1214_v27 = vld [vmem:[#allocation8 + $0xa8] sm:$0xff] }
  0x33   :  { %434 = vmatpush.bf16.msrb.mxu1 %v1041_v30  ;;  %400 = vmatmul.bf16.vlgmr.msra.gmra.mxu2 %v1399_v31  ;;  %v1205_v26 = vld [vmem:[#allocation8 + $0x60] sm:$0xff]  ;;  %v1204_v32 = vld [vmem:[#allocation8 + $0x58] sm:$0xff]  ;;  %v1195_v35 = vld [vmem:[#allocation8 + $0x10] sm:$0xff] }
  0x34   :  { %412 = vmatpush.bf16.msra.mxu3 %v889_v45  ;;  %771 = vmatpush.bf16.msrb.mxu2 %v1200_v17  ;;  %v1213_v34 = vld [vmem:[#allocation8 + $0xa0] sm:$0xff]  ;;  %v1203_v36 = vld [vmem:[#allocation8 + $0x50] sm:$0xff]  ;;  %v1212_v38 = vld [vmem:[#allocation8 + $0x98] sm:$0xff] }
  0x35   :  { %v1194_v44 = vld [vmem:[#allocation8 + $0x8] sm:$0xff]  ;;  %v1211_v50 = vld [vmem:[#allocation8 + $0x90] sm:$0xff]  ;;  %v1193_v51 = vld [vmem:[#allocation8] sm:$0xff] }
  0x36   :  { %421 = vmatpush.bf16.msrb.mxu0 %v1013_v39  ;;  %v1202_v45 = vld [vmem:[#allocation8 + $0x48] sm:$0xff]  ;;  %v1201_v52 = vld [vmem:[#allocation8 + $0x40] sm:$0xff] }
  0x37   :  { %435 = vmatpush.bf16.msrb.mxu1 %v1017_v40  ;;  %v1209_v63 = vld [vmem:[#allocation8 + $0x80] sm:$0xff] }
  0x38   :  { %413 = vmatpush.bf16.msra.mxu3 %v865_v54  ;;  %772 = vmatpush.bf16.msrb.mxu2 %v1199_v19  ;;  %v1210_v54 = vld [vmem:[#allocation8 + $0x88] sm:$0xff] }
  0x3a   :  { %422 = vmatpush.bf16.msrb.mxu0 %v989_v48 }
  0x3b   :  { %436 = vmatpush.bf16.msrb.mxu1 %v993_v49  ;;  %414 = vmatmul.bf16.vlgmr.msra.gmra.mxu3 %v1399_v31 }
  0x3c   :  { %785 = vmatpush.bf16.msrb.mxu3 %v1208_v18  ;;  %773 = vmatpush.bf16.msrb.mxu2 %v1198_v22 }
  0x3e   :  { %423 = vmatpush.bf16.msrb.mxu0 %v965_v55 }
  0x3f   :  { %437 = vmatpush.bf16.msrb.mxu1 %v969_v56 }
  0x40   :  { %786 = vmatpush.bf16.msrb.mxu3 %v1207_v20  ;;  %774 = vmatpush.bf16.msrb.mxu2 %v1197_v25 }
  0x42   :  { %424 = vmatpush.bf16.msrb.mxu0 %v941_v61 }
  0x43   :  { %438 = vmatpush.bf16.msrb.mxu1 %v945_v62 }
  0x44   :  { %787 = vmatpush.bf16.msrb.mxu3 %v1206_v23 }
  0x46   :  { %425 = vmatpush.bf16.msrb.mxu0 %v917_v3 }
  0x47   :  { %439 = vmatpush.bf16.msrb.mxu1 %v921_v4 }
  0x48   :  { %788 = vmatpush.bf16.msrb.mxu3 %v1205_v26 }
  0x4a   :  { %426 = vmatpush.bf16.msrb.mxu0 %v893_v9 }
  0x4b   :  { %440 = vmatpush.bf16.msrb.mxu1 %v897_v10 }
  0x4c   :  { %789 = vmatpush.bf16.msrb.mxu3 %v1204_v32 }
  0x4e   :  { %427 = vmatpush.bf16.msrb.mxu0 %v869_v15 }
  0x4f   :  { %441 = vmatpush.bf16.msrb.mxu1 %v873_v16 }
  0x50   :  { %790 = vmatpush.bf16.msrb.mxu3 %v1203_v36 }
  0x51   :  { %428 = vmatmul.bf16.vlgmr.msrb.gmra.mxu0 %v1399_v31 }
  0x52   :  { %442 = vmatmul.bf16.vlgmr.msrb.gmra.mxu1 %v1399_v31  ;;  %799 = vmatpush.bf16.msra.mxu0 %v1216_v21  ;;  %v1196_v31 = vld [vmem:[#allocation8 + $0x18] sm:$0xff] }
  0x53   :  { %775 = vmatpush.bf16.msrb.mxu2 %v1196_v31 }
  0x54   :  { %791 = vmatpush.bf16.msrb.mxu3 %v1202_v45 }
  0x56   :  { %800 = vmatpush.bf16.msra.mxu0 %v1215_v24 }
  0x57   :  { %776 = vmatpush.bf16.msrb.mxu2 %v1195_v35 }
  0x58   :  { %792 = vmatpush.bf16.msrb.mxu3 %v1201_v52 }
  0x5a   :  { %801 = vmatpush.bf16.msra.mxu0 %v1214_v27 }
  0x5b   :  { %777 = vmatpush.bf16.msrb.mxu2 %v1194_v44 }
  0x5e   :  { %802 = vmatpush.bf16.msra.mxu0 %v1213_v34 }
  0x5f   :  { %778 = vmatpush.bf16.msrb.mxu2 %v1193_v51 }
  0x62   :  { %803 = vmatpush.bf16.msra.mxu0 %v1212_v38 }
  0x66   :  { %804 = vmatpush.bf16.msra.mxu0 %v1211_v50 }
  0x6a   :  { %805 = vmatpush.bf16.msra.mxu0 %v1210_v54 }
  0x6e   :  { %806 = vmatpush.bf16.msra.mxu0 %v1209_v63 }
  0xae   :  { %v1407_v28 = vpop.f32.mrf.mxu0 }
  0xaf   :  { %v1042_v29 = vmul.f32 -1.442695, %v1407_v28  ;;  %v1410_v30 = vpop.f32.mrf.mxu1 }
  0xb0   :  { %v1043_v33 = vmul.f32 -1.442695, %v1410_v30 }
  0xb1   :  { %1230 = vpow2.f32 %v1042_v29 }
  0xb2   :  { %1232 = vpow2.f32 %v1043_v33 }
  0xb6   :  { %v1413_v37 = vpop.f32.mrf.mxu2  ;;  %v1416_v40 = vpop.f32.mrf.mxu0 }
  0xb7   :  { %v1044_v39 = vmul.f32 -1.442695, %v1413_v37  ;;  %v1231_v41 = vpop.eup %1230  ;;  %v1045_v42 = vmul.f32 -1.442695, %v1416_v40  ;;  %v1419_v43 = vpop.f32.mrf.mxu1 }
  0xb8   :  { %v1233_v46 = vpop.eup %1232  ;;  %v466_v47 = vadd.f32 1.0, %v1231_v41  ;;  %v1046_v48 = vmul.f32 -1.442695, %v1419_v43 }
  0xb9   :  { %1234 = vpow2.f32 %v1044_v39  ;;  %v1422_v49 = vadd.f32 1.0, %v1233_v46 }
  0xba   :  { %1236 = vpow2.f32 %v1045_v42  ;;  %v481_v7 = vand.u32 2147483647, %v466_v47  ;;  %v483_v8 = vand.u32 2147483648, %v466_v47  ;;  %vm477_vm1 = vweird.f32 %v466_v47 }
  0xbb   :  { %1238 = vrcp.f32 %v466_v47  ;;  %v496_v12 = vand.u32 2147483647, %v1422_v49  ;;  %vm492_vm2 = vweird.f32 %v1422_v49  ;;  %v498_v15 = vand.u32 2147483648, %v1422_v49 }
  0xbc   :  { %1240 = vrcp.f32 %v1422_v49  ;;  %vm1455_vm4 = vcmp.eq.f32.partialorder %v481_v7, 8.507059e+37  ;;  %v484_v19 = vor.u32 1.1754944e-38, %v483_v8 }
  0xbd   :  { %1242 = vpow2.f32 %v1046_v48  ;;  %vm1465_vm6 = vcmp.eq.f32.partialorder %v496_v12, 8.507059e+37  ;;  %v499_v32 = vor.u32 1.1754944e-38, %v498_v15 }
  0xbe   :  { %v1425_v53 = vpop.f32.mrf.mxu2  ;;  %v415_v25 = vpop.f32.mrf.mxu3 }
  0xbf   :  { %v1235_v55 = vpop.eup %1234  ;;  %v1047_v56 = vmul.f32 -1.442695, %v1425_v53 }
  0xc0   :  { %v1237_v57 = vpop.eup %1236  ;;  %v1428_v58 = vadd.f32 1.0, %v1235_v55 }
  0xc1   :  { %v1239_v59 = vpop.eup %1238  ;;  %v1430_v60 = vadd.f32 1.0, %v1237_v57  ;;  %1244 = vpow2.f32 %v1047_v56 }
  0xc2   :  { %v1432_v61 = vpop.eup %1240  ;;  %v473_v62 = vmul.f32 %v1239_v59, %v466_v47  ;;  %1246 = vrcp.f32 %v1428_v58  ;;  %vm478_vm0 = vweird.f32 %v1239_v59  ;;  %vm507_vm7 = vweird.f32 %v1428_v58 }
  0xc3   :  { %v1243_v0 = vpop.eup %1242  ;;  %v488_v1 = vmul.f32 %v1432_v61, %v1422_v49  ;;  %1248 = vrcp.f32 %v1430_v60  ;;  %vm1451_vm3 = vmor %vm477_vm1, %vm478_vm0  ;;  %vm493_vm5 = vweird.f32 %v1432_v61  ;;  %v526_v24 = vand.u32 2147483647, %v1430_v60 }
  0xc4   :  { %v474_v2 = vsub.f32 1.0, %v473_v62  ;;  %v1438_v5 = vadd.f32 1.0, %v1243_v0  ;;  %v528_v29 = vand.u32 2147483648, %v1430_v60  ;;  %v511_v34 = vand.u32 2147483647, %v1428_v58  ;;  %vm1478_vm8 = vmor %vm492_vm2, %vm493_vm5 }
  0xc5   :  { %v489_v3 = vsub.f32 1.0, %v488_v1  ;;  %v513_v44 = vand.u32 2147483648, %v1428_v58  ;;  %vm522_vm10 = vweird.f32 %v1430_v60  ;;  %vm1488_vm11 = vcmp.eq.f32.partialorder %v526_v24, 8.507059e+37 }
  0xc6   :  { %v475_v4 = vmul.f32 %v1239_v59, %v474_v2  ;;  %1250 = vrcp.f32 %v1438_v5  ;;  %v529_v47 = vor.u32 1.1754944e-38, %v528_v29  ;;  %v541_v49 = vand.u32 2147483647, %v1438_v5 }
  0xc7   :  { %v1245_v6 = vpop.eup %1244  ;;  %v490_v11 = vmul.f32 %v1432_v61, %v489_v3  ;;  %v543_v52 = vand.u32 2147483648, %v1438_v5  ;;  %vm1499_vm15 = vcmp.eq.f32.partialorder %v511_v34, 8.507059e+37  ;;  %vm537_vm1 = vweird.f32 %v1438_v5 }
  0xc8   :  { %v1440_v9 = vpop.eup %1246  ;;  %v476_v10 = vadd.f32 %v1239_v59, %v475_v4  ;;  %v1449_v16 = vadd.f32 1.0, %v1245_v6  ;;  %vm542_vm2 = vcmp.eq.f32.partialorder %v541_v49, 8.507059e+37  ;;  %v417_v6 = vpop.f32.mrf.mxu3 }
  0xc9   :  { %v503_v13 = vmul.f32 %v1440_v9, %v1428_v58  ;;  %v1249_v14 = vpop.eup %1248  ;;  %v491_v23 = vadd.f32 %v1432_v61, %v490_v11  ;;  %vm508_vm12 = vweird.f32 %v1440_v9  ;;  %v544_v4 = vor.u32 1.1754944e-38, %v543_v52 }
  0xca   :  { %v518_v21 = vmul.f32 %v1249_v14, %v1430_v60  ;;  %v480_v22 = vsel %vm1451_vm3, %v1239_v59, %v476_v10  ;;  %1252 = vrcp.f32 %v1449_v16  ;;  %vm523_vm9 = vweird.f32 %v1249_v14  ;;  %vm1508_vm0 = vmor %vm507_vm7, %vm508_vm12 }
  0xcb   :  { %v504_v20 = vsub.f32 1.0, %v503_v13  ;;  %v485_v36 = vsel %vm1455_vm4, %v484_v19, %v480_v22  ;;  %v495_v42 = vsel %vm1478_vm8, %v1432_v61, %v491_v23  ;;  %vm524_vm13 = vmor %vm522_vm10, %vm523_vm9  ;;  %v514_v60 = vor.u32 1.1754944e-38, %v513_v44 }
  0xcc   :  { %v519_v27 = vsub.f32 1.0, %v518_v21  ;;  %v1251_v31 = vpop.eup %1250  ;;  %v562_v50 = vmul.f32 %v485_v36, %v1407_v28  ;;  %v500_v55 = vsel %vm1465_vm6, %v499_v32, %v495_v42  ;;  %v558_v8 = vand.u32 2147483648, %v1449_v16 }
  0xcd   :  { %v505_v33 = vmul.f32 %v1440_v9, %v504_v20  ;;  %v533_v41 = vmul.f32 %v1251_v31, %v1438_v5  ;;  %vm538_vm14 = vweird.f32 %v1251_v31  ;;  %v563_v2 = vmul.f32 %v500_v55, %v1410_v30 }
  0xce   :  { %v429_v35 = vpop.f32.mrf.mxu0  ;;  %v520_v39 = vmul.f32 %v1249_v14, %v519_v27  ;;  %vm539_vm3 = vmor %vm537_vm1, %vm538_vm14  ;;  %v568_v10 = vmul.f32 %v562_v50, %v415_v25  ;;  %v556_v5 = vand.u32 2147483647, %v1449_v16  ;;  %vm552_vm5 = vweird.f32 %v1449_v16 }
  0xcf   :  { %v534_v48 = vsub.f32 1.0, %v533_v41  ;;  %v506_v51 = vadd.f32 %v1440_v9, %v505_v33  ;;  %v443_v1 = vpop.f32.mrf.mxu1  ;;  %v559_v17 = vor.u32 1.1754944e-38, %v558_v8  ;;  %v569_v18 = vmul.f32 %v563_v2, %v429_v35 }
  0xd0   :  { %v521_v46 = vadd.f32 %v1249_v14, %v520_v39  ;;  %v1253_v54 = vpop.eup %1252  ;;  %vm557_vm7 = vcmp.eq.f32.partialorder %v556_v5, 8.507059e+37 }
  0xd1   :  { %v535_v57 = vmul.f32 %v1251_v31, %v534_v48  ;;  %v548_v61 = vmul.f32 %v1253_v54, %v1449_v16  ;;  %v510_v3 = vsel %vm1508_vm0, %v1440_v9, %v506_v51  ;;  %vm553_vm4 = vweird.f32 %v1253_v54 }
  0xd2   :  { %v525_v56 = vsel %vm524_vm13, %v1249_v14, %v521_v46  ;;  %v515_v30 = vsel %vm1499_vm15, %v514_v60, %v510_v3  ;;  %vm554_vm6 = vmor %vm552_vm5, %vm553_vm4 }
  0xd3   :  { %v530_v28 = vsel %vm1488_vm11, %v529_v47, %v525_v56  ;;  %v536_v0 = vadd.f32 %v1251_v31, %v535_v57  ;;  %v549_v58 = vsub.f32 1.0, %v548_v61  ;;  %v564_v20 = vmul.f32 %v515_v30, %v1413_v37 }
  0xd4   :  { %v565_v63 = vmul.f32 %v530_v28, %v1416_v40 }
  0xd5   :  { %v540_v7 = vsel %vm539_vm3, %v1251_v31, %v536_v0  ;;  %v550_v12 = vmul.f32 %v1253_v54, %v549_v58 }
  0xd6   :  { %v571_v40 = vmul.f32 %v565_v63, %v417_v6  ;;  %v545_v11 = vsel %vm542_vm2, %v544_v4, %v540_v7  ;;  %v431_v13 = vpop.f32.mrf.mxu0 }
  0xd7   :  { %v566_v9 = vmul.f32 %v545_v11, %v1419_v43  ;;  %v551_v15 = vadd.f32 %v1253_v54, %v550_v12  ;;  %v445_v25 = vpop.f32.mrf.mxu1  ;;  %v570_v43 = vmul.f32 %v564_v20, %v443_v1 }
  0xd8   :  { %v576_v14 = vpack.c.bf16 %v571_v40, %v568_v10 }
  0xd9   :  { %v572_v19 = vmul.f32 %v566_v9, %v431_v13  ;;  %v555_v21 = vsel %vm554_vm6, %v1253_v54, %v551_v15 }
  0xda   :  { %779 = vmatmul.bf16.vlgmr.msrb.gmra.mxu2 %v576_v14  ;;  %v560_v22 = vsel %vm557_vm7, %v559_v17, %v555_v21 }
  0xdb   :  { %v577_v23 = vpack.c.bf16 %v572_v19, %v569_v18  ;;  %v567_v24 = vmul.f32 %v560_v22, %v1425_v53 }
  0xdd   :  { %793 = vmatmul.bf16.vlgmr.msrb.gmra.mxu3 %v577_v23  ;;  %v573_v26 = vmul.f32 %v567_v24, %v445_v25 }
  0xdf   :  { %v578_v27 = vpack.c.bf16 %v573_v26, %v570_v43 }
  0xe1   :  { %807 = vmatmul.bf16.vlgmr.msra.gmra.mxu0 %v578_v27 }
 0x15d   :  { %v780_v16 = vpop.f32.mrf.mxu2 }
 0x15e   :  { %v808_v31 = vpop.f32.mrf.mxu0 }
 0x160   :  { %v794_v29 = vpop.f32.mrf.mxu3 }
 0x161   :  { %v795_v33 = vadd.f32 %v794_v29, %v780_v16 }
 0x163   :  { %v809_v53 = vadd.f32 %v808_v31, %v795_v33 }
 0x165   :  { %v782_v32 = vpop.f32.mrf.mxu2 }
 0x166   :  { %v810_v37 = vpop.f32.mrf.mxu0 }
 0x168   :  { %v796_v34 = vpop.f32.mrf.mxu3 }
 0x169   :  { %v797_v35 = vadd.f32 %v796_v34, %v782_v32 }
 0x16b   :  { %v811_v36 = vadd.f32 %v810_v37, %v797_v35 }
 0x16d   :  { %v1220_v38 = vpack.c.bf16 %v811_v36, %v809_v53 }
 0x16f   :  { %1221 = vst [vmem:[#allocation9] sm:$0xff] %v1220_v38  }
 0x170   :  { %838 = dma.vmem_to_hbm [thread:$0]  %s831_s29, 128, %s833_s5, [#allocation5], %s1360_s24, %s1360_s24, %s1361_s25  }
 0x171   :  { %1354 = dma.done.wait [#allocation5], 128  }
 0x172   :  { %1355 = vsyncadd [#allocation5], 4294967168 }
 0x173   :  { %843 = vsyncpa [#allocation4], 1 }
 0x174   :  { %844 = vsyncpa [#allocation7], 1 }
 0x175   :  { %845 = vsyncpa [#allocation5], 1 }

</bundles_post_ra>
